<compile_context>
chip_gen: v6e
topology: v6e:2x2x1
jax: 0.10.0
libtpu: 0.0.40
codegen_flags: <defaults>
</compile_context>

<pallas_src>
import numpy as np

import jax
import jax.numpy as jnp
from jax.experimental import pallas as pl
from jax.experimental.pallas import tpu as pltpu


# ----------------------------- config (small, consistent with the module) ----
SCALE = 4                      # opt['scale']
QUANT = 256                    # opt['quant']
B, C, H, W = 2, 3, 16, 16      # hr shape (GT_size=16, in_nc=3)
h, w = H // SCALE, W // SCALE  # lr spatial (4, 4)
P = h * w                      # pixels at LR scale (16)
BP = B * P                     # batch folded into rows (32)
C2 = C * SCALE * SCALE         # squeezed channel count (48)
PIXELS = H * W                 # thops.pixels(hr) = 256

NBIG = 256                     # fused coupling/conv output width (lane padded)
PRE_OFF = 128                  # 'pre' block starts at a 128-lane tile boundary

LOG2PI = float(np.log(2.0 * np.pi))
NLL_SCALE = float(1.0 / (np.log(2.0) * PIXELS))
GAUSS_CONST = float(-0.5 * (2.0 * (-6.0) + LOG2PI))   # -0.5*(2*logs + log2pi), logs = -6
INV_VAR = float(np.exp(12.0))                          # exp(-2*logs), logs = -6


# ----------------------------- the single fused Pallas kernel ----------------
def fused_flow_kernel(base_ld_ref, xu_ref, wbig_ref, bias_ref, lr_ref,
                      q_ref, nll_ref):
    """(ActNorm+inv-1x1-conv+coupling-shift) fused matmul -> affine coupling ->
       split -> quantization -> Gaussian logp -> nll, on (BP, *) rows."""
    # --- ONE MXU matmul: [x | u] @ [[W', 0], [Wc_shift, Wc_pre]] + bias row ---
    # cols 0..47   : x @ W' + b' + shift        (ActNorm already folded into W', b')
    # cols 128..175: u @ Wc_pre + 2.0           (lane-tile aligned split)
    sc = jnp.dot(xu_ref[...].astype(jnp.bfloat16), wbig_ref[...],
                 preferred_element_type=jnp.float32) + bias_ref[...]
    shifted = sc[:, :C2]
    pre = sc[:, PRE_OFF:PRE_OFF + C2]

    # scale = sigmoid(pre), log_scale = log(sigmoid(pre)); single exp reused,
    # computed stably (no log(0) -> -inf for very negative pre).
    t = jnp.exp(-jnp.abs(pre))
    log_scale = -(jnp.maximum(-pre, 0.0) + jnp.log(1.0 + t))
    scale = jnp.where(pre >= 0.0, 1.0, t) / (1.0 + t)
    y = shifted * scale

    # --- split: first C channels form the dirac LR latent; Basic.Quantization ---
    flq = jnp.round(jnp.clip(y[:, :C], 0.0, 1.0) * 255.0) * jnp.float32(1.0 / 255.0)
    q_ref[...] = flq

    # --- GaussianDiag.logp(mean=lr, logs=-6, x=flq), constants folded ---
    diff = flq - lr_ref[...]
    ll = GAUSS_CONST - (0.5 * INV_VAR) * diff * diff

    # --- nll = mean_b( -(logdet_b + logp_b) ) / (log(2)*PIXELS) ---
    # base_ld = -log(quant)*pixels + P*log|det W| + P*sum(actnorm logs)  (hoisted)
    sum_b = (jnp.sum(ll, keepdims=True)
             + jnp.sum(log_scale, keepdims=True))            # (1, 1)
    nll_ref[...] = -(base_ld_ref[0] + sum_b * (1.0 / B)) * NLL_SCALE


def run_fused(base_ld, xu, wbig, bias_row, lr_rows):
    q_rows, nll = pl.pallas_call(
        fused_flow_kernel,
        out_shape=(
            jax.ShapeDtypeStruct((BP, C), jnp.float32),   # quantized fake LR rows
            jax.ShapeDtypeStruct((1, 1), jnp.float32),    # fused nll scalar
        ),
        grid=(1,),                                        # batch folded into rows
        in_specs=[
            pl.BlockSpec(memory_space=pltpu.MemorySpace.SMEM),   # base logdet (1,) f32
            pl.BlockSpec((BP, 2 * C2), lambda i: (0, 0)),        # [x | u] rows (32, 96)
            pl.BlockSpec((2 * C2, NBIG), lambda i: (0, 0)),      # fused weight (96, 256) bf16
            pl.BlockSpec((1, NBIG), lambda i: (0, 0)),           # fused bias row
            pl.BlockSpec((BP, C), lambda i: (0, 0)),             # lr rows
        ],
        out_specs=(
            pl.BlockSpec((BP, C), lambda i: (0, 0)),
            pl.BlockSpec((1, 1), lambda i: (0, 0)),
        ),
        compiler_params=pltpu.CompilerParams(
            dimension_semantics=("arbitrary",)),
    )(base_ld, xu, wbig, bias_row, lr_rows)
    return q_rows, nll[0, 0]


# ----------------------------- glue (layout only, fused by XLA under jit) ----
def squeeze2d(x, factor):
    """Glow SqueezeLayer: NCHW space-to-depth."""
    b, c, hh, ww = x.shape
    x = x.reshape(b, c, hh // factor, factor, ww // factor, factor)
    x = jnp.transpose(x, (0, 1, 3, 5, 2, 4))
    return x.reshape(b, c * factor * factor, hh // factor, ww // factor)


def hcflownet_sr_forward(hr, lr, u_feat, params, noise_key):
    """normal_flow_diracLR: returns (quantized fake_lr_from_hr in [0,1], nll)."""
    wbig, bias_row, base_logdet = params

    # dequantization noise: hr + U(0,1)/quant (wrapper-side jax.random so the
    # kernel has no TPU-only PRNG primitives and also runs under interpret mode)
    hr_noisy = hr + jax.random.uniform(noise_key, hr.shape, jnp.float32) / QUANT

    # squeeze HR to LR scale; fold (batch, pixel) into rows, channels on lanes
    x_sq = squeeze2d(hr_noisy, SCALE)                              # (B, 48, 4, 4)
    x_rows = jnp.transpose(x_sq, (0, 2, 3, 1)).reshape(BP, C2)     # (32, 48)
    xu = jnp.concatenate([x_rows, u_feat], axis=1)                 # (32, 96)
    lr_rows = jnp.transpose(lr, (0, 2, 3, 1)).reshape(BP, C)       # (32, 3)

    q_rows, nll = run_fused(base_logdet, xu, wbig, bias_row, lr_rows)

    # back to NCHW; outer clamp(0,1) is a no-op after in-kernel clamp+round.
    fake_lr_q = jnp.transpose(q_rows.reshape(B, h, w, C), (0, 3, 1, 2))
    return fake_lr_q, nll


def init_params(key):
    k1, k2, k3, k4, k5 = jax.random.split(key, 5)
    # invertible 1x1 conv weight: random orthogonal (guaranteed invertible)
    q_mat, _ = jnp.linalg.qr(jax.random.normal(k1, (C2, C2), jnp.float32))
    w_inv = q_mat.astype(jnp.float32)
    # coupling projections (stand-ins for the conditional-affine sub-net output)
    wc_shift = 0.05 * jax.random.normal(k2, (C2, C2), jnp.float32)
    wc_pre = 0.05 * jax.random.normal(k5, (C2, C2), jnp.float32)
    an_bias = 0.10 * jax.random.normal(k3, (1, C2), jnp.float32)
    an_logs = 0.05 * jax.random.normal(k4, (1, C2), jnp.float32)

    # --- fold ActNorm into the 1x1 conv: x@W' + b' == ((x+bias)*exp(logs))@W ---
    s = jnp.exp(an_logs)                                    # (1, C2)
    w_fold = s.T * w_inv                                    # diag(exp(logs)) @ W
    b_fold = (an_bias * s) @ w_inv                          # (1, C2)

    # --- block matrix fusing inv-conv + coupling shift/pre projections -------
    # [x | u] @ Wbig -> cols 0..47 = x@W' + shift ; cols 128..175 = pre
    wbig = jnp.zeros((2 * C2, NBIG), jnp.float32)
    wbig = wbig.at[:C2, :C2].set(w_fold)
    wbig = wbig.at[C2:, :C2].set(wc_shift)
    wbig = wbig.at[C2:, PRE_OFF:PRE_OFF + C2].set(wc_pre)
    wbig = wbig.astype(jnp.bfloat16)                        # bf16 MXU operands

    bias_row = jnp.zeros((1, NBIG), jnp.float32)
    bias_row = bias_row.at[:, :C2].set(b_fold)
    bias_row = bias_row.at[:, PRE_OFF:PRE_OFF + C2].set(2.0)

    # hoisted data-independent log-det terms:
    #   dequant offset + P*log|det W| + P*sum(actnorm logs)
    _, w_logdet = jnp.linalg.slogdet(w_inv)
    base_logdet = (jnp.asarray([-np.log(QUANT) * PIXELS], jnp.float32)
                   + jnp.float32(P) * w_logdet.astype(jnp.float32)
                   + jnp.float32(P) * jnp.sum(an_logs))
    return wbig, bias_row, base_logdet


if __name__ == "__main__":
    key = jax.random.PRNGKey(0)
    k_hr, k_lr, k_u, k_par, k_noise = jax.random.split(key, 5)

    hr = jax.random.uniform(k_hr, (B, C, H, W), jnp.float32)       # NCHW HR image
    lr = jax.random.uniform(k_lr, (B, C, h, w), jnp.float32)       # NCHW LR image
    # conditioning features "u" (stand-in for the RRDB conditional encoder output)
    u_feat = 0.1 * jax.random.normal(k_u, (BP, C2), jnp.float32)
    params = init_params(k_par)

    fwd = jax.jit(hcflownet_sr_forward)
    fake_lr_q, nll = fwd(hr, lr, u_feat, params, k_noise)
    jax.block_until_ready((fake_lr_q, nll))

    assert fake_lr_q.shape == (B, C, h, w)
    assert fake_lr_q.dtype == jnp.float32
    assert nll.shape == ()
    assert bool(jnp.isfinite(nll))
    assert bool(jnp.all(fake_lr_q >= 0.0)) and bool(jnp.all(fake_lr_q <= 1.0))
    print("KERNEL_OK")
</pallas_src>

<mosaic_0001>
module attributes {stable_mosaic.version = 11 : i64} {
  func.func @fused_flow_kernel(%arg0: i32, %arg1: memref<1xf32, #tpu.memory_space<smem>>, %arg2: memref<32x96xf32, #tpu.memory_space<vmem>>, %arg3: memref<96x256xbf16, #tpu.memory_space<vmem>>, %arg4: memref<1x256xf32, #tpu.memory_space<vmem>>, %arg5: memref<32x3xf32, #tpu.memory_space<vmem>>, %arg6: memref<32x3xf32, #tpu.memory_space<vmem>>, %arg7: memref<1x1xf32, #tpu.memory_space<vmem>>) attributes {dimension_semantics = [#tpu.dimension_semantics<arbitrary>], iteration_bounds = array<i64: 1>, scalar_prefetch = 0 : i64, scratch_operands = 0 : i64, tpu.core_type = #tpu.core_type<tc>, window_params = [{transform_indices = @transform_0, window_bounds = array<i64: 1>}, {pipeline_mode = #tpu.pipeline_mode<synchronous>, transform_indices = @transform_1, window_bounds = array<i64: 32, 96>}, {pipeline_mode = #tpu.pipeline_mode<synchronous>, transform_indices = @transform_2, window_bounds = array<i64: 96, 256>}, {pipeline_mode = #tpu.pipeline_mode<synchronous>, transform_indices = @transform_3, window_bounds = array<i64: 1, 256>}, {pipeline_mode = #tpu.pipeline_mode<synchronous>, transform_indices = @transform_4, window_bounds = array<i64: 32, 3>}, {pipeline_mode = #tpu.pipeline_mode<synchronous>, transform_indices = @transform_5, window_bounds = array<i64: 32, 3>}, {pipeline_mode = #tpu.pipeline_mode<synchronous>, transform_indices = @transform_6, window_bounds = array<i64: 1, 1>}]} {
    %c0 = arith.constant 0 : index
    %c0_0 = arith.constant 0 : index
    %0 = vector.load %arg2[%c0, %c0_0] : memref<32x96xf32, #tpu.memory_space<vmem>>, vector<32x96xf32>
    %1 = arith.truncf %0 : vector<32x96xf32> to vector<32x96xbf16>
    %c0_1 = arith.constant 0 : index
    %c0_2 = arith.constant 0 : index
    %2 = vector.load %arg3[%c0_1, %c0_2] : memref<96x256xbf16, #tpu.memory_space<vmem>>, vector<96x256xbf16>
    %cst = arith.constant dense<0.000000e+00> : vector<32x256xf32>
    %3 = tpu.matmul %1, %2, %cst {dimension_numbers = #tpu.dot_dimension_numbers<[1], [0], [0], [1], [0, 0, 1, 1], [], []>} : vector<32x96xbf16>, vector<96x256xbf16>, vector<32x256xf32> -> vector<32x256xf32>
    %c0_3 = arith.constant 0 : index
    %c0_4 = arith.constant 0 : index
    %4 = vector.load %arg4[%c0_3, %c0_4] : memref<1x256xf32, #tpu.memory_space<vmem>>, vector<1x256xf32>
    %5 = vector.broadcast %4 : vector<1x256xf32> to vector<32x256xf32>
    %6 = arith.addf %3, %5 : vector<32x256xf32>
    %7 = vector.extract_strided_slice %6 {offsets = [0, 0], sizes = [32, 48], strides = [1, 1]} : vector<32x256xf32> to vector<32x48xf32>
    %8 = vector.extract_strided_slice %6 {offsets = [0, 128], sizes = [32, 48], strides = [1, 1]} : vector<32x256xf32> to vector<32x48xf32>
    %9 = math.absf %8 : vector<32x48xf32>
    %cst_5 = arith.constant 0.000000e+00 : f32
    %10 = vector.broadcast %cst_5 : f32 to vector<32x48xf32>
    %11 = arith.subf %10, %9 : vector<32x48xf32>
    %12 = math.exp %11 : vector<32x48xf32>
    %cst_6 = arith.constant 0.000000e+00 : f32
    %13 = vector.broadcast %cst_6 : f32 to vector<32x48xf32>
    %14 = arith.subf %13, %8 : vector<32x48xf32>
    %cst_7 = arith.constant 0.000000e+00 : f32
    %15 = vector.broadcast %cst_7 : f32 to vector<32x48xf32>
    %16 = arith.maximumf %14, %15 : vector<32x48xf32>
    %cst_8 = arith.constant 1.000000e+00 : f32
    %17 = vector.broadcast %cst_8 : f32 to vector<32x48xf32>
    %18 = arith.addf %17, %12 : vector<32x48xf32>
    %19 = math.log %18 : vector<32x48xf32>
    %20 = arith.addf %16, %19 : vector<32x48xf32>
    %cst_9 = arith.constant 0.000000e+00 : f32
    %21 = vector.broadcast %cst_9 : f32 to vector<32x48xf32>
    %22 = arith.subf %21, %20 : vector<32x48xf32>
    %cst_10 = arith.constant 0.000000e+00 : f32
    %23 = vector.broadcast %cst_10 : f32 to vector<32x48xf32>
    %24 = arith.cmpf oge, %8, %23 : vector<32x48xf32>
    %cst_11 = arith.constant 1.000000e+00 : f32
    %25 = vector.broadcast %cst_11 : f32 to vector<32x48xf32>
    %26 = arith.select %24, %25, %12 : vector<32x48xi1>, vector<32x48xf32>
    %cst_12 = arith.constant 1.000000e+00 : f32
    %27 = vector.broadcast %cst_12 : f32 to vector<32x48xf32>
    %28 = arith.addf %27, %12 : vector<32x48xf32>
    %29 = arith.divf %26, %28 : vector<32x48xf32>
    %30 = arith.mulf %7, %29 : vector<32x48xf32>
    %31 = vector.extract_strided_slice %30 {offsets = [0, 0], sizes = [32, 3], strides = [1, 1]} : vector<32x48xf32> to vector<32x3xf32>
    %cst_13 = arith.constant 0.000000e+00 : f32
    %cst_14 = arith.constant 1.000000e+00 : f32
    %32 = vector.broadcast %cst_13 : f32 to vector<32x3xf32>
    %33 = arith.maximumf %32, %31 : vector<32x3xf32>
    %34 = vector.broadcast %cst_14 : f32 to vector<32x3xf32>
    %35 = arith.minimumf %34, %33 : vector<32x3xf32>
    %cst_15 = arith.constant 2.550000e+02 : f32
    %36 = vector.broadcast %cst_15 : f32 to vector<32x3xf32>
    %37 = arith.mulf %35, %36 : vector<32x3xf32>
    %38 = math.roundeven %37 : vector<32x3xf32>
    %cst_16 = arith.constant 0.00392156886 : f32
    %39 = vector.broadcast %cst_16 : f32 to vector<32x3xf32>
    %40 = arith.mulf %38, %39 : vector<32x3xf32>
    %c0_17 = arith.constant 0 : index
    %c0_18 = arith.constant 0 : index
    %41 = vector.load %arg6[%c0_17, %c0_18] : memref<32x3xf32, #tpu.memory_space<vmem>>, vector<32x3xf32>
    tpu.vector_store %arg6[%c0_17, %c0_18], %40 {strides = array<i32>} : memref<32x3xf32, #tpu.memory_space<vmem>>, vector<32x3xf32>,
    %c0_19 = arith.constant 0 : index
    %c0_20 = arith.constant 0 : index
    %42 = vector.load %arg5[%c0_19, %c0_20] : memref<32x3xf32, #tpu.memory_space<vmem>>, vector<32x3xf32>
    %43 = arith.subf %40, %42 : vector<32x3xf32>
    %cst_21 = arith.constant 81377.3984 : f32
    %44 = vector.broadcast %cst_21 : f32 to vector<32x3xf32>
    %45 = arith.mulf %44, %43 : vector<32x3xf32>
    %46 = arith.mulf %45, %43 : vector<32x3xf32>
    %cst_22 = arith.constant 5.08106136 : f32
    %47 = vector.broadcast %cst_22 : f32 to vector<32x3xf32>
    %48 = arith.subf %47, %46 : vector<32x3xf32>
    %49 = vector.shape_cast %48 : vector<32x3xf32> to vector<1x32x3xf32>
    %cst_23 = arith.constant dense<0.000000e+00> : vector<1xf32>
    %50 = vector.multi_reduction <add>, %49, %cst_23 [1, 2] : vector<1x32x3xf32> to vector<1xf32>
    %51 = vector.shape_cast %50 : vector<1xf32> to vector<1x1x1xf32>
    %52 = vector.extract %51[0, 0, 0] : f32 from vector<1x1x1xf32>
    %53 = vector.broadcast %52 : f32 to vector<1x1xf32>
    %54 = vector.shape_cast %22 : vector<32x48xf32> to vector<1x32x48xf32>
    %cst_24 = arith.constant dense<0.000000e+00> : vector<1xf32>
    %55 = vector.multi_reduction <add>, %54, %cst_24 [1, 2] : vector<1x32x48xf32> to vector<1xf32>
    %56 = vector.shape_cast %55 : vector<1xf32> to vector<1x1x1xf32>
    %57 = vector.extract %56[0, 0, 0] : f32 from vector<1x1x1xf32>
    %58 = vector.broadcast %57 : f32 to vector<1x1xf32>
    %59 = arith.addf %53, %58 : vector<1x1xf32>
    %c0_25 = arith.constant 0 : index
    %60 = memref.load %arg1[%c0_25] : memref<1xf32, #tpu.memory_space<smem>>
    %cst_26 = arith.constant 5.000000e-01 : f32
    %61 = vector.broadcast %cst_26 : f32 to vector<1x1xf32>
    %62 = arith.mulf %59, %61 : vector<1x1xf32>
    %63 = vector.broadcast %60 : f32 to vector<1x1xf32>
    %64 = arith.addf %63, %62 : vector<1x1xf32>
    %cst_27 = arith.constant 0.000000e+00 : f32
    %65 = vector.broadcast %cst_27 : f32 to vector<1x1xf32>
    %66 = arith.subf %65, %64 : vector<1x1xf32>
    %cst_28 = arith.constant 0.00563552743 : f32
    %67 = vector.broadcast %cst_28 : f32 to vector<1x1xf32>
    %68 = arith.mulf %66, %67 : vector<1x1xf32>
    %c0_29 = arith.constant 0 : index
    %c0_30 = arith.constant 0 : index
    %69 = vector.load %arg7[%c0_29, %c0_30] : memref<1x1xf32, #tpu.memory_space<vmem>>, vector<1x1xf32>
    tpu.vector_store %arg7[%c0_29, %c0_30], %68 {strides = array<i32>} : memref<1x1xf32, #tpu.memory_space<vmem>>, vector<1x1xf32>,
    return
  }
  func.func @transform_0(%arg0: i32) -> i32 {
    %c0_i32 = arith.constant 0 : i32
    %c0_i32_0 = arith.constant 0 : i32
    return %c0_i32 : i32
  }
  func.func @transform_1(%arg0: i32) -> (i32, i32) {
    %c0_i32 = arith.constant 0 : i32
    %c0_i32_0 = arith.constant 0 : i32
    %c0_i32_1 = arith.constant 0 : i32
    return %c0_i32, %c0_i32_0 : i32, i32
  }
  func.func @transform_2(%arg0: i32) -> (i32, i32) {
    %c0_i32 = arith.constant 0 : i32
    %c0_i32_0 = arith.constant 0 : i32
    %c0_i32_1 = arith.constant 0 : i32
    return %c0_i32, %c0_i32_0 : i32, i32
  }
  func.func @transform_3(%arg0: i32) -> (i32, i32) {
    %c0_i32 = arith.constant 0 : i32
    %c0_i32_0 = arith.constant 0 : i32
    %c0_i32_1 = arith.constant 0 : i32
    return %c0_i32, %c0_i32_0 : i32, i32
  }
  func.func @transform_4(%arg0: i32) -> (i32, i32) {
    %c0_i32 = arith.constant 0 : i32
    %c0_i32_0 = arith.constant 0 : i32
    %c0_i32_1 = arith.constant 0 : i32
    return %c0_i32, %c0_i32_0 : i32, i32
  }
  func.func @transform_5(%arg0: i32) -> (i32, i32) {
    %c0_i32 = arith.constant 0 : i32
    %c0_i32_0 = arith.constant 0 : i32
    %c0_i32_1 = arith.constant 0 : i32
    return %c0_i32, %c0_i32_0 : i32, i32
  }
  func.func @transform_6(%arg0: i32) -> (i32, i32) {
    %c0_i32 = arith.constant 0 : i32
    %c0_i32_0 = arith.constant 0 : i32
    %c0_i32_1 = arith.constant 0 : i32
    return %c0_i32, %c0_i32_0 : i32, i32
  }
}

</mosaic_0001>

<bundles_post_ra>
// kernel: hcflownet_sr_forward.1
= control target key start
LH: loop header
LB: loop body
LE: loop exit
PB: predicated region body
PF: predicated region fallthrough
CT: control target
= control target key end

     0   :  { %v474_v2 = vmov 0   ;;  %s624_s0 = inlined_call_operand.<no memory space> [shape: f32[1], index: 0, kind: input, shape index: {}]   ;;  %s625_s1 = inlined_call_operand.vmem [shape: f32[32,96], index: 1, kind: input, shape index: {}]   ;;  %s626_s2 = inlined_call_operand.vmem [shape: bf16[96,256], index: 2, kind: input, shape index: {}]   ;;  %s627_s3 = inlined_call_operand.vmem [shape: f32[1,256], index: 3, kind: input, shape index: {}]   ;;  %s628_s4 = inlined_call_operand.vmem [shape: f32[32,3], index: 4, kind: input, shape index: {}]   ;;  %s629_s5 = inlined_call_operand.vmem [shape: f32[32,3], index: 5, kind: output, shape index: {0}]   ;;  %s630_s6 = inlined_call_operand.hbm [shape: f32[1,1], index: 6, kind: output, shape index: {1}]  }
   0x1   :  { %v410_v0 = vld [vmem:[%s626_s2 + $0x54] ss:$8 sps:$4 sm:$0xff]   ;;  %v412_v1 = vld [vmem:[%s626_s2 + $0x50] ss:$8 sps:$4 sm:$0xff]   ;;  %154 = vmatprep.mubr.bf16.mxu0 %v474_v2  ;;  %164 = vmatprep.mubr.bf16.mxu1 %v474_v2  ;;  %v413_v3 = vld [vmem:[%s626_s2 + $0x44] ss:$8 sps:$4 sm:$0xff]  }
   0x2   :  { %126 = vmatprep.subr.bf16.mxu0 %v410_v0  ;;  %360 = vmatprep.subr.bf16.mxu1 %v410_v0  ;;  %v415_v4 = vld [vmem:[%s626_s2 + $0x40] ss:$8 sps:$4 sm:$0xff]   ;;  %v416_v5 = vld [vmem:[%s626_s2 + $0x34] ss:$8 sps:$4 sm:$0xff]   ;;  %v418_v6 = vld [vmem:[%s626_s2 + $0x30] ss:$8 sps:$4 sm:$0xff]  }
   0x3   :  { %127 = vmatpush1.bf16.msra.mxu0 %v412_v1  ;;  %366 = vmatpush1.bf16.msra.mxu1 %v412_v1  ;;  %v419_v7 = vld [vmem:[%s626_s2 + $0x24] ss:$8 sps:$4 sm:$0xff]  }
   0x4   :  { %128 = vmatprep.subr.bf16.mxu0 %v413_v3  ;;  %361 = vmatprep.subr.bf16.mxu1 %v413_v3 }
   0x7   :  { %129 = vmatpush1.bf16.msra.mxu0 %v415_v4  ;;  %367 = vmatpush1.bf16.msra.mxu1 %v415_v4 }
   0x8   :  { %130 = vmatprep.subr.bf16.mxu0 %v416_v5  ;;  %362 = vmatprep.subr.bf16.mxu1 %v416_v5 }
   0x9   :  { %13 = vsyncpa [#allocation4], 0  ;;  %v421_v8 = vld [vmem:[%s626_s2 + $0x20] ss:$8 sps:$4 sm:$0xff]   ;;  %v422_v9 = vld [vmem:[%s626_s2 + $0x14] ss:$8 sps:$4 sm:$0xff]   ;;  %v45_v19 = vlaneseq }
   0xa   :  { %v424_v10 = vld [vmem:[%s626_s2 + $0x10] ss:$8 sps:$4 sm:$0xff]   ;;  %v425_v11 = vld [vmem:[%s626_s2 + $0x4] ss:$8 sps:$4 sm:$0xff]   ;;  %v427_v12 = vld [vmem:[%s626_s2] ss:$8 sps:$4 sm:$0xff]  }
   0xb   :  { %131 = vmatpush1.bf16.msra.mxu0 %v418_v6  ;;  %368 = vmatpush1.bf16.msra.mxu1 %v418_v6  ;;  %v25_v13 = vld [vmem:[%s625_s1] sm:$0xff]  ;;  %v26_v14 = vld [vmem:[%s625_s1 + $0x8] sm:$0xff]  ;;  %v27_v15 = vld [vmem:[%s625_s1 + $0x10] sm:$0xff]  ;;  %vm115_vm0 = vcmask 785408   ;;  %v46_v20 = vshrl.u32 %v45_v19, 7  ;;  %vm301_vm5 = vcmask 392192  }
   0xc   :  { %132 = vmatprep.subr.bf16.mxu0 %v419_v7  ;;  %363 = vmatprep.subr.bf16.mxu1 %v419_v7  ;;  %v28_v16 = vld [vmem:[%s625_s1 + $0x18] sm:$0xff]  ;;  %v29_v17 = vpack.c.bf16 %v26_v14, %v25_v13  ;;  %v43_v22 = vld [vmem:[%s627_s3] sm:$0x3]  ;;  %vm259_vm6 = vcmask 23552   ;;  %s475_s22 = smov [#allocation3]   ;;  %vm326_vm11 = vcmask 0  }
   0xd   :  { %v30_v18 = vpack.c.bf16 %v28_v16, %v27_v15  ;;  %v51_v21 = vsub.s32 1, %v46_v20  ;;  %v47_v56 = vsub.s32 0, %v46_v20  ;;  %s336_s23 = sshll.u32 %s475_s22, 4  ;;  %s337_s23 = int_to_ptr.vmem [resolvable:$true] %s336_s23 }
   0xe   :  { %s452_s24 = scalar_lea.vmem %s337_s23, 16  ;;  %s456_s25 = scalar_lea.vmem %s337_s23, 32 }
   0xf   :  { %133 = vmatpush1.bf16.msra.mxu0 %v421_v8  ;;  %369 = vmatpush1.bf16.msra.mxu1 %v421_v8  ;;  %v52_v23 = vrot.slane %v43_v22, %v51_v21  ;;  %v48_v57 = vrot.slane %v43_v22, %v47_v56  ;;  %p453_p0 = scmp.ne.s32.totalorder %s337_s23, %s452_s24  ;;  %p457_p1 = scmp.lt.s32.totalorder %s337_s23, %s337_s23 }
  0x10   :  { %134 = vmatprep.subr.bf16.mxu0 %v422_v9  ;;  %364 = vmatprep.subr.bf16.mxu1 %v422_v9  ;;  %p458_p2 = scmp.lt.s32.totalorder %s456_s25, %s452_s24 }
  0x12   :  { %p459_p3 = por %p458_p2, %p457_p1 }
  0x13   :  { %135 = vmatpush1.bf16.msra.mxu0 %v424_v10  ;;  %370 = vmatpush1.bf16.msra.mxu1 %v424_v10 }
  0x14   :  { %136 = vmatprep.subr.bf16.mxu0 %v425_v11  ;;  %365 = vmatprep.subr.bf16.mxu1 %v425_v11  ;;  %p460_p4 = pnand %p459_p3, %p453_p0 }
  0x17   :  { %137 = vmatpush1.bf16.msra.mxu0 %v427_v12  ;;  %371 = vmatpush1.bf16.msra.mxu1 %v427_v12 }
  0x1a   :  { %358 = vmatmul.mubr.msk.bf16.vlgmr.msra.gmra.mxu0 %vm115_vm0, %v29_v17  ;;  %359 = vmatmul.mubr.msk.bf16.vlgmr.msra.gmra.mxu1 %vm115_vm0, %v30_v18 }
  0xda   :  { %v156_v24 = vpop.f32.mrf.mxu0  ;;  %v166_v25 = vpop.f32.mrf.mxu1 }
  0xdb   :  { %v157_v61 = vadd.f32 %v156_v24, %v48_v57  ;;  %v167_v0 = vadd.f32 %v166_v25, %v48_v57 }
  0xdc   :  { %v158_v26 = vpop.f32.mrf.mxu0  ;;  %v168_v27 = vpop.f32.mrf.mxu1 }
  0xdd   :  { %v159_v28 = vadd.f32 %v158_v26, %v52_v23  ;;  %v169_v29 = vadd.f32 %v168_v27, %v52_v23 }
  0xde   :  { %v160_v30 = vpop.f32.mrf.mxu0  ;;  %v562_v31 = vpop.f32.mrf.mxu1 }
  0xdf   :  { %v175_v32 = vand.u32 2147483647, %v159_v28  ;;  %v177_v33 = vand.u32 2147483647, %v169_v29  ;;  %v191_v58 = vsub.f32 0.0, %v159_v28  ;;  %v193_v59 = vsub.f32 0.0, %v169_v29 }
  0xe0   :  { %v162_v34 = vpop.f32.mrf.mxu0  ;;  %v172_v35 = vpop.f32.mrf.mxu1  ;;  %vm219_vm1 = vcmp.ge.f32.partialorder %v159_v28, 0.0  ;;  %vm221_vm2 = vcmp.ge.f32.partialorder %v169_v29, 0.0  ;;  %v161_v2 = vadd.f32 %v160_v30, %v48_v57  ;;  %v171_v28 = vadd.f32 %v562_v31, %v48_v57 }
  0xe1   :  { %v179_v36 = vsub.f32 0.0, %v175_v32  ;;  %v181_v37 = vsub.f32 0.0, %v177_v33  ;;  %v163_v38 = vadd.f32 %v162_v34, %v52_v23  ;;  %v564_v39 = vadd.f32 %v172_v35, %v52_v23 }
  0xe2   :  { %v195_v4 = vmax.f32 %v191_v58, 0.0  ;;  %v197_v9 = vmax.f32 %v193_v59, 0.0 }
  0xe3   :  { %v183_v40 = vmul.f32 1.442695, %v179_v36  ;;  %v187_v41 = vmul.f32 1.442695, %v181_v37  ;;  %v176_v42 = vand.u32 2147483647, %v163_v38 }
  0xe4   :  { %v178_v43 = vand.u32 2147483647, %v564_v39  ;;  %v192_v62 = vsub.f32 0.0, %v163_v38  ;;  %vm220_vm3 = vcmp.ge.f32.partialorder %v163_v38, 0.0  ;;  %v194_v11 = vsub.f32 0.0, %v564_v39 }
  0xe5   :  { %428 = vpow2.f32 %v183_v40  ;;  %v180_v44 = vsub.f32 0.0, %v176_v42  ;;  %vm222_vm4 = vcmp.ge.f32.partialorder %v564_v39, 0.0 }
  0xe6   :  { %430 = vpow2.f32 %v187_v41  ;;  %v182_v45 = vsub.f32 0.0, %v178_v43  ;;  %v196_v14 = vmax.f32 %v192_v62, 0.0  ;;  %v198_v37 = vmax.f32 %v194_v11, 0.0 }
  0xe7   :  { %v185_v46 = vmul.f32 1.442695, %v180_v44 }
  0xe8   :  { %v189_v47 = vmul.f32 1.442695, %v182_v45 }
  0xe9   :  { %432 = vpow2.f32 %v185_v46 }
  0xea   :  { %434 = vpow2.f32 %v189_v47 }
  0xf2   :  { %v429_v48 = vpop.eup %428 }
  0xf3   :  { %v431_v49 = vpop.eup %430  ;;  %v199_v50 = vadd.f32 1.0, %v429_v48  ;;  %v223_v1 = vsel %vm219_vm1, 1.0, %v429_v48 }
  0xf4   :  { %v201_v51 = vadd.f32 1.0, %v431_v49  ;;  %v225_v7 = vsel %vm221_vm2, 1.0, %v431_v49 }
  0xf5   :  { %436 = vlog2.f32 %v199_v50 }
  0xf6   :  { %v433_v52 = vpop.eup %432  ;;  %438 = vrcp.f32 %v199_v50 }
  0xf7   :  { %v435_v53 = vpop.eup %434  ;;  %440 = vrcp.f32 %v201_v51  ;;  %v200_v54 = vadd.f32 1.0, %v433_v52  ;;  %v224_v19 = vsel %vm220_vm3, 1.0, %v433_v52 }
  0xf8   :  { %v202_v55 = vadd.f32 1.0, %v435_v53  ;;  %442 = vlog2.f32 %v201_v51  ;;  %v226_v20 = vsel %vm222_vm4, 1.0, %v435_v53 }
  0xf9   :  { %444 = vlog2.f32 %v200_v54 }
  0xfa   :  { %446 = vrcp.f32 %v200_v54 }
  0xfb   :  { %448 = vrcp.f32 %v202_v55 }
  0xfc   :  { %450 = vlog2.f32 %v202_v55 }
 0x102   :  { %v437_v60 = vpop.eup %436 }
 0x103   :  { %v439_v63 = vpop.eup %438  ;;  %v204_v5 = vmul.f32 0.6931472, %v437_v60 }
 0x104   :  { %v441_v3 = vpop.eup %440  ;;  %v228_v6 = vmul.f32 %v439_v63, %v223_v1 }
 0x105   :  { %v443_v8 = vpop.eup %442  ;;  %v232_v10 = vmul.f32 %v441_v3, %v225_v7  ;;  %v211_v22 = vadd.f32 %v204_v5, %v195_v4 }
 0x106   :  { %v445_v12 = vpop.eup %444  ;;  %v235_v13 = vmul.f32 %v228_v6, %v157_v61  ;;  %v208_v15 = vmul.f32 0.6931472, %v443_v8 }
 0x107   :  { %v447_v16 = vpop.eup %446  ;;  %v237_v17 = vmul.f32 %v232_v10, %v167_v0  ;;  %v206_v18 = vmul.f32 0.6931472, %v445_v12  ;;  %v215_v39 = vsub.f32 0.0, %v211_v22 }
 0x108   :  { %v449_v21 = vpop.eup %448  ;;  %v239_v23 = vmax.f32 %v235_v13, 0.0  ;;  %v230_v24 = vmul.f32 %v447_v16, %v224_v19  ;;  %v213_v25 = vadd.f32 %v208_v15, %v197_v9  ;;  %v264_v15 = vld [vmem:[%s628_s4] sm:$0xff] }
 0x109   :  { %v451_v26 = vpop.eup %450  ;;  %v241_v27 = vmax.f32 %v237_v17, 0.0  ;;  %v212_v29 = vadd.f32 %v206_v18, %v196_v14  ;;  %v234_v30 = vmul.f32 %v449_v21, %v226_v20  ;;  %v302_v54 = vsel %vm301_vm5, %v215_v39, 0.0  ;;  %v266_v21 = vld [vmem:[%s628_s4 + $0x10] sm:$0xff] }
 0x10a   :  { %v243_v32 = vmin.f32 %v239_v23, 1.0  ;;  %v236_v33 = vmul.f32 %v230_v24, %v161_v2  ;;  %v210_v34 = vmul.f32 0.6931472, %v451_v26  ;;  %v217_v42 = vsub.f32 0.0, %v213_v25 }
 0x10b   :  { %v245_v35 = vmin.f32 %v241_v27, 1.0  ;;  %v216_v36 = vsub.f32 0.0, %v212_v29  ;;  %v238_v38 = vmul.f32 %v234_v30, %v171_v28  ;;  %v265_v27 = vld [vmem:[%s628_s4 + $0x8] sm:$0xff] }
 0x10c   :  { %v247_v40 = vmul.f32 255.0, %v243_v32  ;;  %v240_v41 = vmax.f32 %v236_v33, 0.0  ;;  %v214_v45 = vadd.f32 %v210_v34, %v198_v37  ;;  %v305_v55 = vsel %vm301_vm5, %v217_v42, 0.0  ;;  %v267_v32 = vld [vmem:[%s628_s4 + $0x18] sm:$0xff] }
 0x10d   :  { %v249_v43 = vmul.f32 255.0, %v245_v35  ;;  %v242_v44 = vmax.f32 %v238_v38, 0.0  ;;  %v303_v31 = vsel %vm301_vm5, %v216_v36, 0.0 }
 0x10e   :  { %v374_v46 = vcvt.f32.s32 %v247_v40  ;;  %v244_v47 = vmin.f32 %v240_v41, 1.0  ;;  %v372_v49 = vand.u32 2147483647, %v247_v40  ;;  %v218_v58 = vsub.f32 0.0, %v214_v45 }
 0x10f   :  { %v246_v48 = vmin.f32 %v242_v44, 1.0  ;;  %v388_v50 = vand.u32 2147483647, %v249_v43  ;;  %v390_v51 = vcvt.f32.s32 %v249_v43  ;;  %v304_v59 = vadd.f32 %v303_v31, %v302_v54 }
 0x110   :  { %v248_v52 = vmul.f32 255.0, %v244_v47  ;;  %v375_v53 = vcvt.s32.f32 %v374_v46  ;;  %v377_v62 = vand.u32 2147483648, %v247_v40  ;;  %v393_v63 = vand.u32 2147483648, %v249_v43 }
 0x111   :  { %v250_v56 = vmul.f32 255.0, %v246_v48  ;;  %v391_v57 = vcvt.s32.f32 %v390_v51  ;;  %vm573_vm7 = vcmp.lt.f32.partialorder %v372_v49, 8388608.0  ;;  %vm577_vm8 = vcmp.lt.f32.partialorder %v388_v50, 8388608.0 }
 0x112   :  { %v382_v60 = vcvt.f32.s32 %v248_v52  ;;  %v376_v61 = vand.u32 2147483647, %v375_v53  ;;  %v380_v5 = vand.u32 2147483647, %v248_v52  ;;  %v306_v7 = vadd.f32 %v305_v55, %v304_v59 }
 0x113   :  { %v392_v2 = vand.u32 2147483647, %v391_v57  ;;  %v398_v3 = vcvt.f32.s32 %v250_v56  ;;  %v385_v8 = vand.u32 2147483648, %v248_v52  ;;  %v307_v11 = vsel %vm301_vm5, %v218_v58, 0.0 }
 0x114   :  { %v378_v4 = vor.u32 %v377_v62, %v376_v61  ;;  %v383_v6 = vcvt.s32.f32 %v382_v60  ;;  %v396_v14 = vand.u32 2147483647, %v250_v56  ;;  %v308_v16 = vadd.f32 %v307_v11, %v306_v7 }
 0x115   :  { %v394_v9 = vor.u32 %v393_v63, %v392_v2  ;;  %v399_v10 = vcvt.s32.f32 %v398_v3  ;;  %v401_v19 = vand.u32 2147483648, %v250_v56  ;;  %vm381_vm9 = vcmp.lt.f32.partialorder %v380_v5, 8388608.0 }
 0x116   :  { %v379_v12 = vsel %vm573_vm7, %v378_v4, %v247_v40  ;;  %v384_v13 = vand.u32 2147483647, %v383_v6  ;;  %vm397_vm10 = vcmp.lt.f32.partialorder %v396_v14, 8388608.0  ;;  %v322_v7 = vstv %s624_s0 }
 0x117   :  { %v395_v17 = vsel %vm577_vm8, %v394_v9, %v249_v43  ;;  %v400_v18 = vand.u32 2147483647, %v399_v10  ;;  %v255_v20 = vmul.f32 0.003921569, %v379_v12 }
 0x118   :  { %v386_v22 = vor.u32 %v385_v8, %v384_v13  ;;  %v257_v23 = vmul.f32 0.003921569, %v395_v17 }
 0x119   :  { %v402_v24 = vor.u32 %v401_v19, %v400_v18  ;;  %v268_v25 = vsub.f32 %v255_v20, %v264_v15  ;;  %260 = vst.msk [vmem:[%s629_s5] sm:$0xff] %vm259_vm6, %v255_v20 }
 0x11a   :  { %v387_v26 = vsel %vm381_vm9, %v386_v22, %v248_v52  ;;  %262 = vst.msk [vmem:[%s629_s5 + $0x10] sm:$0xff] %vm259_vm6, %v257_v23  ;;  %v270_v28 = vsub.f32 %v257_v23, %v266_v21 }
 0x11b   :  { %v403_v29 = vsel %vm397_vm10, %v402_v24, %v250_v56  ;;  %v256_v30 = vmul.f32 0.003921569, %v387_v26  ;;  %v272_v33 = vmul.f32 81377.4, %v268_v25 }
 0x11c   :  { %v258_v34 = vmul.f32 0.003921569, %v403_v29  ;;  %v274_v35 = vmul.f32 81377.4, %v270_v28 }
 0x11d   :  { %261 = vst.msk [vmem:[%s629_s5 + $0x8] sm:$0xff] %vm259_vm6, %v256_v30  ;;  %v269_v36 = vsub.f32 %v256_v30, %v265_v27  ;;  %v276_v37 = vmul.f32 %v272_v33, %v268_v25 }
 0x11e   :  { %263 = vst.msk [vmem:[%s629_s5 + $0x18] sm:$0xff] %vm259_vm6, %v258_v34  ;;  %v271_v38 = vsub.f32 %v258_v34, %v267_v32  ;;  %v278_v40 = vmul.f32 %v274_v35, %v270_v28 }
 0x11f   :  { %v273_v39 = vmul.f32 81377.4, %v269_v36  ;;  %v280_v43 = vsub.f32 5.0810614, %v276_v37 }
 0x120   :  { %v275_v41 = vmul.f32 81377.4, %v271_v38  ;;  %v282_v46 = vsub.f32 5.0810614, %v278_v40 }
 0x121   :  { %v277_v42 = vmul.f32 %v273_v39, %v269_v36  ;;  %v284_v31 = vsel %vm259_vm6, %v280_v43, 0.0 }
 0x122   :  { %v279_v44 = vmul.f32 %v275_v41, %v271_v38  ;;  %v287_v50 = vsel %vm259_vm6, %v282_v46, 0.0 }
 0x123   :  { %v281_v45 = vsub.f32 5.0810614, %v277_v42 }
 0x124   :  { %v283_v47 = vsub.f32 5.0810614, %v279_v44 }
 0x125   :  { %v285_v48 = vsel %vm259_vm6, %v281_v45, 0.0 }
 0x126   :  { %v286_v49 = vadd.f32 %v285_v48, %v284_v31  ;;  %v289_v52 = vsel %vm259_vm6, %v283_v47, 0.0 }
 0x128   :  { %v288_v51 = vadd.f32 %v287_v50, %v286_v49 }
 0x12a   :  { %v290_v53 = vadd.f32 %v289_v52, %v288_v51 }
 0x12c   :  { %291 = vadd.xlane.f32.xlu0 %v290_v53 }
 0x130   :  { %309 = vadd.xlane.f32.xlu0 %v308_v16 }
 0x1b5   :  { %v292_v54 = vpop.xlane.xlu0 %291 }
 0x1b6   :  { %v293_v55 = vrot.slane %v292_v54, 4 }
 0x1b8   :  { %v294_v56 = vadd.f32 %v293_v55, %v292_v54 }
 0x1b9   :  { %v310_v57 = vpop.xlane.xlu0 %309 }
 0x1ba   :  { %v295_v58 = vrot.slane %v294_v56, 2  ;;  %v311_v59 = vrot.slane %v310_v57, 4 }
 0x1bc   :  { %v312_v60 = vadd.f32 %v311_v59, %v310_v57  ;;  %v296_v61 = vadd.f32 %v295_v58, %v294_v56 }
 0x1be   :  { %v313_v62 = vrot.slane %v312_v60, 2  ;;  %v297_v63 = vrot.slane %v296_v61, 1 }
 0x1c0   :  { %v314_v0 = vadd.f32 %v313_v62, %v312_v60  ;;  %v298_v1 = vadd.f32 %v297_v63, %v296_v61 }
 0x1c2   :  { %404 = vpush %v298_v1  ;;  %v315_v2 = vrot.slane %v314_v0, 1 }
 0x1c4   :  { %v316_v3 = vadd.f32 %v315_v2, %v314_v0 }
 0x1c6   :  { %406 = vpush %v316_v3 }
 0x1f3   :  { %s405_s4 = spop %404 }
 0x1f4   :  { %v300_v4 = vstv %s405_s4 }
 0x1f7   :  { %s407_s5 = spop %406 }
 0x1f8   :  { %v318_v5 = vstv %s407_s5 }
 0x1f9   :  { %v319_v6 = vadd.f32 %v318_v5, %v300_v4 }
 0x1fb   :  { %v321_v8 = vmul.f32 0.5, %v319_v6 }
 0x1fd   :  { %v323_v9 = vadd.f32 %v322_v7, %v321_v8 }
 0x1ff   :  { %v324_v10 = vsub.f32 0.0, %v323_v9 }
 0x201   :  { %v325_v11 = vmul.f32 0.0056355274, %v324_v10 }
 0x203   :  { %327 = vst.msk [vmem:[#allocation3] sm:$0x1] %vm326_vm11, %v325_v11 }
 0x204   :  { %463 = shalt.err (!%p460_p4)
}
 0x205   :  { %339 = dma.vmem_to_hbm [thread:$0]  %s337_s23, 16, %s630_s6, [#allocation4]  }
 0x206   :  { %472 = dma.done.wait [#allocation4], 16  }
 0x207   :  { %473 = vsyncadd [#allocation4], 4294967280 }
 0x208   :  { %345 = vsyncpa [#allocation4], 1 }

</bundles_post_ra>
